<compile_context>
chip_gen: v6e
topology: v6e:2x2x1
jax: 0.10.0
libtpu: 0.0.40
codegen_flags: <defaults>
</compile_context>

<pallas_src>
import functools

import jax
import jax.numpy as jnp
from jax.experimental import pallas as pl
from jax.experimental.pallas import tpu as pltpu

LN_EPS = 1e-5


def _round_up(a, m):
    return (a + m - 1) // m * m


def _prenorm_kernel(x_ref, gamma_ref, beta_ref, w_ref, b_ref, o_ref, *, d_valid):
    # x_ref:     (tm, Dp) tile of rows (Dp = D padded to a multiple of 128)
    # gamma/beta:(1, Dp)   LayerNorm affine params (zero in the padded lanes)
    # w_ref:     (Dp, tn)  column tile of W^T (zero in padded rows/cols)
    # b_ref:     (1, tn)   column tile of the Linear bias
    # o_ref:     (tm, tn)  output tile
    x = x_ref[...].astype(jnp.float32)
    gamma = gamma_ref[...].astype(jnp.float32)   # hoisted, read once per step
    beta = beta_ref[...].astype(jnp.float32)
    bias = b_ref[...].astype(jnp.float32)

    dp = x.shape[-1]
    if d_valid == dp:
        # --- LayerNorm over last dim (biased variance, eps inside rsqrt) ---
        mean = jnp.mean(x, axis=-1, keepdims=True)
        centered = x - mean
        var = jnp.mean(centered * centered, axis=-1, keepdims=True)
    else:
        # Padded lanes of x are zero, so the raw sum is already the valid sum;
        # mask the centered values so they don't pollute the variance.
        lane = jax.lax.broadcasted_iota(jnp.int32, x.shape, dimension=1)
        valid = lane < d_valid
        inv_d = jnp.float32(1.0 / d_valid)
        mean = jnp.sum(x, axis=-1, keepdims=True) * inv_d
        centered = jnp.where(valid, x - mean, 0.0)
        var = jnp.sum(centered * centered, axis=-1, keepdims=True) * inv_d

    inv_std = jax.lax.rsqrt(var + LN_EPS)
    # gamma/beta are zero in padded lanes, so y is zero there too.
    y = centered * inv_std * gamma + beta

    # --- fn = Linear(dim, dim): out = y @ W^T + b ---
    # Feed the MXU in the weight's native dtype (bf16 recommended); accumulate f32.
    out = jnp.dot(y.astype(w_ref.dtype), w_ref[...],
                  preferred_element_type=jnp.float32)
    o_ref[...] = (out + bias).astype(o_ref.dtype)


@functools.partial(jax.jit, static_argnames=("tm_max", "tn_max"))
def prenorm_linear(x, gamma, beta, w, b, *, tm_max=256, tn_max=512):
    """x: (B, S, D). Returns fn(LayerNorm(x)) with fn = Linear(D, D)."""
    B, S, D = x.shape
    M = B * S

    # Row tile: large (MXU/pipeline friendly), multiple of the sublane packing
    # factor for the input dtype (8 for f32, 16 for bf16, 32 for 8-bit).
    sub = {4: 8, 2: 16, 1: 32}[x.dtype.itemsize]
    tm = min(_round_up(tm_max, sub), _round_up(M, sub))
    Mp = _round_up(M, tm)

    # Column (output-feature) tile: lane-dense, bounded so the double-buffered
    # weight tile stays ~<= 16 MiB of VMEM even for large D.
    Dp = _round_up(D, 128)
    w_bytes = w.dtype.itemsize
    tn_budget = max(128, (8 * 1024 * 1024 // (Dp * w_bytes)) // 128 * 128)
    tn = min(Dp, _round_up(tn_max, 128), tn_budget)
    while Dp % tn:
        tn -= 128

    # Zero-pad everything to (Mp, Dp) so the output last dim is lane-dense.
    x2 = x.reshape(M, D)
    if Mp != M or Dp != D:
        x2 = jnp.pad(x2, ((0, Mp - M), (0, Dp - D)))
    pad_d = ((0, 0), (0, Dp - D))
    gamma2 = jnp.pad(gamma.reshape(1, D), pad_d)
    beta2 = jnp.pad(beta.reshape(1, D), pad_d)
    b2 = jnp.pad(b.reshape(1, D), pad_d)
    wt = jnp.pad(w.T, ((0, Dp - D), (0, Dp - D)))  # kernel computes y @ W^T

    # VMEM budget: double-buffered x, weight and output tiles plus small params.
    est = 2 * (tm * Dp * x.dtype.itemsize
               + Dp * tn * w_bytes
               + tm * tn * x.dtype.itemsize) + 8 * Dp * 4
    vmem_limit = int(min(64 * 1024 * 1024, max(32 * 1024 * 1024, 2 * est)))

    kernel = functools.partial(_prenorm_kernel, d_valid=D)

    out2 = pl.pallas_call(
        kernel,
        out_shape=jax.ShapeDtypeStruct((Mp, Dp), x.dtype),
        grid_spec=pltpu.PrefetchScalarGridSpec(
            num_scalar_prefetch=0,
            # Column tiles OUTER, row tiles INNER: the (Dp, tn) weight tile is
            # constant across the inner row sweep (no re-DMA of the weight).
            grid=(Dp // tn, Mp // tm),
            in_specs=[
                pl.BlockSpec((tm, Dp), lambda j, i: (i, 0)),   # x rows
                pl.BlockSpec((1, Dp), lambda j, i: (0, 0)),    # gamma
                pl.BlockSpec((1, Dp), lambda j, i: (0, 0)),    # beta
                pl.BlockSpec((Dp, tn), lambda j, i: (0, j)),   # W^T column tile
                pl.BlockSpec((1, tn), lambda j, i: (0, j)),    # bias column tile
            ],
            out_specs=pl.BlockSpec((tm, tn), lambda j, i: (i, j)),
        ),
        compiler_params=pltpu.CompilerParams(
            dimension_semantics=("parallel", "parallel"),
            vmem_limit_bytes=vmem_limit,
        ),
    )(x2, gamma2, beta2, wt, b2)

    return out2[:M, :D].reshape(B, S, D)


def _reference(x, gamma, beta, w, b):
    xf = x.astype(jnp.float32)
    mean = jnp.mean(xf, axis=-1, keepdims=True)
    var = jnp.mean((xf - mean) ** 2, axis=-1, keepdims=True)
    y = (xf - mean) * jax.lax.rsqrt(var + LN_EPS)
    y = y * gamma.astype(jnp.float32) + beta.astype(jnp.float32)
    return (y @ w.T.astype(jnp.float32) + b.astype(jnp.float32)).astype(x.dtype)


if __name__ == "__main__":
    B, S, D = 2, 8, 32
    key = jax.random.PRNGKey(0)
    kx, kg, kb, kw, kbias = jax.random.split(key, 5)

    x = jax.random.normal(kx, (B, S, D), dtype=jnp.float32)
    # LayerNorm affine params (PyTorch inits gamma=1, beta=0; perturb slightly
    # but deterministically so the affine path is exercised).
    gamma = 1.0 + 0.1 * jax.random.normal(kg, (D,), dtype=jnp.float32)
    beta = 0.1 * jax.random.normal(kb, (D,), dtype=jnp.float32)
    # fn = Linear(D, D) params, deterministic.
    w = jax.random.normal(kw, (D, D), dtype=jnp.float32) / jnp.sqrt(D)
    b = 0.1 * jax.random.normal(kbias, (D,), dtype=jnp.float32)

    # --- f32 path (exactness check) ---
    out = jax.block_until_ready(prenorm_linear(x, gamma, beta, w, b))
    ref = _reference(x, gamma, beta, w, b)
    assert out.shape == (B, S, D)
    assert jnp.allclose(out, ref, atol=1e-3, rtol=1e-3), "f32 mismatch vs reference"

    # --- bf16 path (recommended perf config: bf16 I/O + bf16 MXU, f32 LN/accum) ---
    xb, gb, bb, wb, biasb = (t.astype(jnp.bfloat16) for t in (x, gamma, beta, w, b))
    out16 = jax.block_until_ready(prenorm_linear(xb, gb, bb, wb, biasb))
    ref16 = _reference(xb.astype(jnp.float32), gb.astype(jnp.float32),
                       bb.astype(jnp.float32), wb.astype(jnp.float32),
                       biasb.astype(jnp.float32))
    assert out16.dtype == jnp.bfloat16
    assert jnp.allclose(out16.astype(jnp.float32), ref16, atol=5e-2, rtol=5e-2), \
        "bf16 mismatch vs reference"

    print("KERNEL_OK")
</pallas_src>

<mosaic_0001>
module attributes {stable_mosaic.version = 11 : i64} {
  func.func @_prenorm_kernel(%arg0: i32, %arg1: i32, %arg2: memref<16x128xf32, #tpu.memory_space<vmem>>, %arg3: memref<1x128xf32, #tpu.memory_space<vmem>>, %arg4: memref<1x128xf32, #tpu.memory_space<vmem>>, %arg5: memref<128x128xf32, #tpu.memory_space<vmem>>, %arg6: memref<1x128xf32, #tpu.memory_space<vmem>>, %arg7: memref<16x128xf32, #tpu.memory_space<vmem>>) attributes {dimension_semantics = [#tpu.dimension_semantics<parallel>, #tpu.dimension_semantics<parallel>], iteration_bounds = array<i64: 1, 1>, scalar_prefetch = 0 : i64, scratch_operands = 0 : i64, tpu.core_type = #tpu.core_type<tc>, window_params = [{transform_indices = @transform_0, window_bounds = array<i64: 16, 128>}, {pipeline_mode = #tpu.pipeline_mode<synchronous>, transform_indices = @transform_1, window_bounds = array<i64: 1, 128>}, {pipeline_mode = #tpu.pipeline_mode<synchronous>, transform_indices = @transform_2, window_bounds = array<i64: 1, 128>}, {transform_indices = @transform_3, window_bounds = array<i64: 128, 128>}, {transform_indices = @transform_4, window_bounds = array<i64: 1, 128>}, {transform_indices = @transform_5, window_bounds = array<i64: 16, 128>}]} {
    %c0 = arith.constant 0 : index
    %c0_0 = arith.constant 0 : index
    %0 = vector.load %arg2[%c0, %c0_0] : memref<16x128xf32, #tpu.memory_space<vmem>>, vector<16x128xf32>
    %c0_1 = arith.constant 0 : index
    %c0_2 = arith.constant 0 : index
    %1 = vector.load %arg3[%c0_1, %c0_2] : memref<1x128xf32, #tpu.memory_space<vmem>>, vector<1x128xf32>
    %c0_3 = arith.constant 0 : index
    %c0_4 = arith.constant 0 : index
    %2 = vector.load %arg4[%c0_3, %c0_4] : memref<1x128xf32, #tpu.memory_space<vmem>>, vector<1x128xf32>
    %c0_5 = arith.constant 0 : index
    %c0_6 = arith.constant 0 : index
    %3 = vector.load %arg6[%c0_5, %c0_6] : memref<1x128xf32, #tpu.memory_space<vmem>>, vector<1x128xf32>
    %4 = tpu.iota {dimensions = array<i32: 1>} : vector<16x128xi32>
    %c32_i32 = arith.constant 32 : i32
    %5 = vector.broadcast %c32_i32 : i32 to vector<16x128xi32>
    %6 = arith.cmpi slt, %4, %5 : vector<16x128xi32>
    %cst = arith.constant dense<0.000000e+00> : vector<16xf32>
    %7 = vector.multi_reduction <add>, %0, %cst [1] : vector<16x128xf32> to vector<16xf32>
    %8 = vector.shape_cast %7 : vector<16xf32> to vector<16x1xf32>
    %cst_7 = arith.constant 3.125000e-02 : f32
    %9 = vector.broadcast %cst_7 : f32 to vector<16x1xf32>
    %10 = arith.mulf %8, %9 : vector<16x1xf32>
    %11 = vector.broadcast %10 : vector<16x1xf32> to vector<16x128xf32>
    %12 = arith.subf %0, %11 : vector<16x128xf32>
    %cst_8 = arith.constant 0.000000e+00 : f32
    %13 = vector.broadcast %cst_8 : f32 to vector<16x128xf32>
    %14 = arith.select %6, %12, %13 : vector<16x128xi1>, vector<16x128xf32>
    %15 = arith.mulf %14, %14 : vector<16x128xf32>
    %cst_9 = arith.constant dense<0.000000e+00> : vector<16xf32>
    %16 = vector.multi_reduction <add>, %15, %cst_9 [1] : vector<16x128xf32> to vector<16xf32>
    %17 = vector.shape_cast %16 : vector<16xf32> to vector<16x1xf32>
    %cst_10 = arith.constant 3.125000e-02 : f32
    %18 = vector.broadcast %cst_10 : f32 to vector<16x1xf32>
    %19 = arith.mulf %17, %18 : vector<16x1xf32>
    %cst_11 = arith.constant 9.99999974E-6 : f32
    %20 = vector.broadcast %cst_11 : f32 to vector<16x1xf32>
    %21 = arith.addf %19, %20 : vector<16x1xf32>
    %22 = math.rsqrt %21 : vector<16x1xf32>
    %23 = vector.broadcast %22 : vector<16x1xf32> to vector<16x128xf32>
    %24 = arith.mulf %14, %23 : vector<16x128xf32>
    %25 = vector.broadcast %1 : vector<1x128xf32> to vector<16x128xf32>
    %26 = arith.mulf %24, %25 : vector<16x128xf32>
    %27 = vector.broadcast %2 : vector<1x128xf32> to vector<16x128xf32>
    %28 = arith.addf %26, %27 : vector<16x128xf32>
    %c0_12 = arith.constant 0 : index
    %c0_13 = arith.constant 0 : index
    %29 = vector.load %arg5[%c0_12, %c0_13] : memref<128x128xf32, #tpu.memory_space<vmem>>, vector<128x128xf32>
    %cst_14 = arith.constant dense<0.000000e+00> : vector<16x128xf32>
    %30 = tpu.matmul %28, %29, %cst_14 {dimension_numbers = #tpu.dot_dimension_numbers<[1], [0], [0], [1], [0, 0, 1, 1], [], []>} : vector<16x128xf32>, vector<128x128xf32>, vector<16x128xf32> -> vector<16x128xf32>
    %31 = vector.broadcast %3 : vector<1x128xf32> to vector<16x128xf32>
    %32 = arith.addf %30, %31 : vector<16x128xf32>
    %c0_15 = arith.constant 0 : index
    %c0_16 = arith.constant 0 : index
    %33 = vector.load %arg7[%c0_15, %c0_16] : memref<16x128xf32, #tpu.memory_space<vmem>>, vector<16x128xf32>
    tpu.vector_store %arg7[%c0_15, %c0_16], %32 {strides = array<i32>} : memref<16x128xf32, #tpu.memory_space<vmem>>, vector<16x128xf32>,
    return
  }
  func.func @transform_0(%arg0: i32, %arg1: i32) -> (i32, i32) {
    %c0_i32 = arith.constant 0 : i32
    %c0_i32_0 = arith.constant 0 : i32
    return %arg1, %c0_i32 : i32, i32
  }
  func.func @transform_1(%arg0: i32, %arg1: i32) -> (i32, i32) {
    %c0_i32 = arith.constant 0 : i32
    %c0_i32_0 = arith.constant 0 : i32
    %c0_i32_1 = arith.constant 0 : i32
    return %c0_i32, %c0_i32_0 : i32, i32
  }
  func.func @transform_2(%arg0: i32, %arg1: i32) -> (i32, i32) {
    %c0_i32 = arith.constant 0 : i32
    %c0_i32_0 = arith.constant 0 : i32
    %c0_i32_1 = arith.constant 0 : i32
    return %c0_i32, %c0_i32_0 : i32, i32
  }
  func.func @transform_3(%arg0: i32, %arg1: i32) -> (i32, i32) {
    %c0_i32 = arith.constant 0 : i32
    %c0_i32_0 = arith.constant 0 : i32
    return %c0_i32, %arg0 : i32, i32
  }
  func.func @transform_4(%arg0: i32, %arg1: i32) -> (i32, i32) {
    %c0_i32 = arith.constant 0 : i32
    %c0_i32_0 = arith.constant 0 : i32
    return %c0_i32, %arg0 : i32, i32
  }
  func.func @transform_5(%arg0: i32, %arg1: i32) -> (i32, i32) {
    %c0_i32 = arith.constant 0 : i32
    return %arg1, %arg0 : i32, i32
  }
}

</mosaic_0001>

<bundles_post_ra>
// kernel: prenorm_linear.1
= control target key start
LH: loop header
LB: loop body
LE: loop exit
PB: predicated region body
PF: predicated region fallthrough
CT: control target
= control target key end

     0   :  { %v25_v4 = vlaneseq  ;;  %s330_s0 = inlined_call_operand.vmem [shape: f32[16,128], index: 0, kind: input, shape index: {}]   ;;  %s331_s3 = inlined_call_operand.vmem [shape: f32[128,128], index: 3, kind: input, shape index: {}]   ;;  %s332_s1 = inlined_call_operand.vmem [shape: f32[1,128], index: 1, kind: input, shape index: {}]   ;;  %s333_s2 = inlined_call_operand.vmem [shape: f32[1,128], index: 2, kind: input, shape index: {}]   ;;  %s334_s4 = inlined_call_operand.vmem [shape: f32[1,128], index: 4, kind: input, shape index: {}]   ;;  %s335_s5 = inlined_call_operand.vmem [shape: f32[16,128], index: 5, kind: output, shape index: {}]  }
   0x1   :  { %v20_v0 = vld [vmem:[%s330_s0] sm:$0xff]  ;;  %v21_v1 = vld [vmem:[%s330_s0 + $0x8] sm:$0xff]  ;;  %v83_v2 = vld [vmem:[%s331_s3 + $0x78] sm:$0xff] }
   0x2   :  { %28 = vadd.xlane.f32.xlu0 %v20_v0  ;;  %v82_v3 = vld [vmem:[%s331_s3 + $0x70] sm:$0xff]  ;;  %192 = vmatprep.subr.mxu0 %v83_v2  ;;  %v26_v5 = vand.u32 127, %v25_v4  ;;  %v81_v16 = vld [vmem:[%s331_s3 + $0x68] sm:$0xff]  ;;  %v80_v17 = vld [vmem:[%s331_s3 + $0x60] sm:$0xff] }
   0x3   :  { %193 = vmatpush3.msra.mxu0 %v83_v2  ;;  %v79_v18 = vld [vmem:[%s331_s3 + $0x58] sm:$0xff]  ;;  %v78_v19 = vld [vmem:[%s331_s3 + $0x50] sm:$0xff]  ;;  %v77_v20 = vld [vmem:[%s331_s3 + $0x48] sm:$0xff] }
   0x4   :  { %194 = vmatprep.subr.mxu0 %v82_v3  ;;  %vm27_vm0 = vcmp.lt.s32.totalorder %v26_v5, 32  ;;  %v76_v21 = vld [vmem:[%s331_s3 + $0x40] sm:$0xff]  ;;  %v75_v22 = vld [vmem:[%s331_s3 + $0x38] sm:$0xff]  ;;  %v74_v23 = vld [vmem:[%s331_s3 + $0x30] sm:$0xff] }
   0x5   :  { %195 = vmatpush3.msra.mxu0 %v82_v3  ;;  %v73_v24 = vld [vmem:[%s331_s3 + $0x28] sm:$0xff]  ;;  %v72_v25 = vld [vmem:[%s331_s3 + $0x20] sm:$0xff]  ;;  %v71_v26 = vld [vmem:[%s331_s3 + $0x18] sm:$0xff] }
   0x6   :  { %30 = vadd.xlane.f32.xlu0 %v21_v1  ;;  %196 = vmatprep.subr.mxu0 %v81_v16  ;;  %v70_v27 = vld [vmem:[%s331_s3 + $0x10] sm:$0xff]  ;;  %v69_v28 = vld [vmem:[%s331_s3 + $0x8] sm:$0xff]  ;;  %v68_v29 = vld [vmem:[%s331_s3] sm:$0xff] }
   0x7   :  { %197 = vmatpush3.msra.mxu0 %v81_v16  ;;  %v171_v37 = vld [vmem:[%s332_s1] ss:$0 sm:$0xff] }
   0x8   :  { %198 = vmatprep.subr.mxu0 %v80_v17  ;;  %v172_v39 = vld [vmem:[%s333_s2] ss:$0 sm:$0xff] }
   0x9   :  { %199 = vmatpush3.msra.mxu0 %v80_v17  ;;  %v173_v46 = vld [vmem:[%s334_s4] ss:$0 sm:$0xff] }
   0xa   :  { %200 = vmatprep.subr.mxu0 %v79_v18 }
   0xb   :  { %201 = vmatpush3.msra.mxu0 %v79_v18 }
   0xc   :  { %202 = vmatprep.subr.mxu0 %v78_v19 }
   0xd   :  { %203 = vmatpush3.msra.mxu0 %v78_v19 }
   0xe   :  { %204 = vmatprep.subr.mxu0 %v77_v20 }
   0xf   :  { %205 = vmatpush3.msra.mxu0 %v77_v20 }
  0x10   :  { %206 = vmatprep.subr.mxu0 %v76_v21 }
  0x11   :  { %207 = vmatpush3.msra.mxu0 %v76_v21 }
  0x12   :  { %208 = vmatprep.subr.mxu0 %v75_v22 }
  0x13   :  { %209 = vmatpush3.msra.mxu0 %v75_v22 }
  0x14   :  { %210 = vmatprep.subr.mxu0 %v74_v23 }
  0x15   :  { %211 = vmatpush3.msra.mxu0 %v74_v23 }
  0x16   :  { %212 = vmatprep.subr.mxu0 %v73_v24 }
  0x17   :  { %213 = vmatpush3.msra.mxu0 %v73_v24 }
  0x18   :  { %214 = vmatprep.subr.mxu0 %v72_v25 }
  0x19   :  { %215 = vmatpush3.msra.mxu0 %v72_v25 }
  0x1a   :  { %216 = vmatprep.subr.mxu0 %v71_v26 }
  0x1b   :  { %217 = vmatpush3.msra.mxu0 %v71_v26 }
  0x1c   :  { %218 = vmatprep.subr.mxu0 %v70_v27 }
  0x1d   :  { %219 = vmatpush3.msra.mxu0 %v70_v27 }
  0x1e   :  { %220 = vmatprep.subr.mxu0 %v69_v28 }
  0x1f   :  { %221 = vmatpush3.msra.mxu0 %v69_v28 }
  0x20   :  { %222 = vmatprep.subr.mxu0 %v68_v29 }
  0x21   :  { %223 = vmatpush3.msra.mxu0 %v68_v29 }
  0x8b   :  { %v29_v6 = vpop.xlane.xlu0 %28 }
  0x8c   :  { %v32_v7 = vmul.f32 0.03125, %v29_v6 }
  0x8e   :  { %v34_v8 = vsub.f32 %v20_v0, %v32_v7 }
  0x8f   :  { %v31_v9 = vpop.xlane.xlu0 %30 }
  0x90   :  { %v33_v10 = vmul.f32 0.03125, %v31_v9  ;;  %v36_v11 = vsel %vm27_vm0, %v34_v8, 0.0 }
  0x91   :  { %v38_v12 = vmul.f32 %v36_v11, %v36_v11 }
  0x92   :  { %v35_v13 = vsub.f32 %v21_v1, %v33_v10 }
  0x93   :  { %40 = vadd.xlane.f32.xlu1 %v38_v12 }
  0x94   :  { %v37_v14 = vsel %vm27_vm0, %v35_v13, 0.0 }
  0x95   :  { %v39_v15 = vmul.f32 %v37_v14, %v37_v14 }
  0x97   :  { %42 = vadd.xlane.f32.xlu1 %v39_v15 }
 0x11c   :  { %v41_v30 = vpop.xlane.xlu1 %40 }
 0x11d   :  { %v44_v31 = vmul.f32 0.03125, %v41_v30 }
 0x11f   :  { %v46_v32 = vadd.f32 1e-05, %v44_v31 }
 0x120   :  { %v43_v33 = vpop.xlane.xlu1 %42 }
 0x121   :  { %227 = vrsqrt.f32 %v46_v32  ;;  %v45_v34 = vmul.f32 0.03125, %v43_v33 }
 0x123   :  { %v47_v35 = vadd.f32 1e-05, %v45_v34 }
 0x125   :  { %229 = vrsqrt.f32 %v47_v35 }
 0x12e   :  { %v228_v36 = vpop.eup %227 }
 0x12f   :  { %v50_v38 = vmul.f32 %v228_v36, %v36_v11 }
 0x131   :  { %v58_v40 = vmul.f32 %v171_v37, %v50_v38 }
 0x132   :  { %v230_v41 = vpop.eup %229 }
 0x133   :  { %v51_v42 = vmul.f32 %v230_v41, %v37_v14  ;;  %v66_v43 = vadd.f32 %v172_v39, %v58_v40 }
 0x135   :  { %v59_v44 = vmul.f32 %v171_v37, %v51_v42  ;;  %224 = vmatprep.mubr.f32.mxu0 %v66_v43 }
 0x137   :  { %v67_v45 = vadd.f32 %v172_v39, %v59_v44 }
 0x139   :  { %225 = vmatmul.mubr.f32.vlgmr.msra.gmra.mxu0 %v67_v45 }
 0x1f9   :  { %v226_v47 = vpop.f32.mrf.mxu0 }
 0x1fa   :  { %v162_v48 = vadd.f32 %v226_v47, %v173_v46 }
 0x1fb   :  { %v156_v49 = vpop.f32.mrf.mxu0 }
 0x1fc   :  { %166 = vst [vmem:[%s335_s5 + $0x8] sm:$0xff] %v162_v48  ;;  %v157_v50 = vadd.f32 %v173_v46, %v156_v49 }
 0x1fe   :  { %165 = vst [vmem:[%s335_s5] sm:$0xff] %v157_v50 }

</bundles_post_ra>
